<compile_context>
chip_gen: v5e
topology: v5e:2x2
jax: 0.10.0
libtpu: 0.0.40
codegen_flags: <defaults>
</compile_context>

<pallas_src>
import jax
import jax.numpy as jnp
from jax import lax
from jax.experimental import pallas as pl
from jax.experimental.pallas import tpu as pltpu


def _round_up(n, m):
    return (n + m - 1) // m * m


def _cdiv(a, b):
    return (a + b - 1) // b


def _make_kernel(D, fuse_fc1):
    two_d = 2 * D

    def kernel(x_ref, y_ref, w1_ref, b1_ref, w2_ref, b2_ref, w3_ref, b3_ref, out_ref):
        # Inputs stream in as f32 and are cast to bf16 on the VPU here, so the
        # wrapper never pays an extra HBM round-trip for the cast.
        xb = x_ref[...].astype(jnp.bfloat16)
        yb = y_ref[...].astype(jnp.bfloat16)

        # fc1 + ReLU : h1 = relu([x|y] @ W1 + b1)                       [TB, 128] f32
        if fuse_fc1:
            # Lane-concat in VMEM (never materialized in HBM) -> one K=2D matmul.
            xy = jnp.concatenate([xb, yb], axis=1)
            h1 = jnp.dot(xy, w1_ref[...], preferred_element_type=jnp.float32)
        else:
            # 2D > 128: two K=D matmuls against the two halves of the stacked W1.
            h1 = jnp.dot(xb, w1_ref[0:D, :], preferred_element_type=jnp.float32)
            h1 = h1 + jnp.dot(yb, w1_ref[D:two_d, :], preferred_element_type=jnp.float32)
        h1 = jnp.maximum(h1 + b1_ref[...], 0.0)

        # fc2 + ReLU (native 64 output lanes; VMEM-only intermediate)    [TB, 64] f32
        h2 = jnp.dot(h1.astype(jnp.bfloat16), w2_ref[...],
                     preferred_element_type=jnp.float32)
        h2 = jnp.maximum(h2 + b2_ref[...], 0.0)

        # fc3 as a lane-dense [1, TB] row: contract the 64 hidden lanes of both
        # operands directly (no materialized h2^T), bf16 operands / f32 accumulate.
        # w3 is stored as an [8, 64] bf16 slab with the real weights in row 0.
        o = lax.dot_general(w3_ref[...], h2.astype(jnp.bfloat16),
                            dimension_numbers=(((1,), (1,)), ((), ())),
                            preferred_element_type=jnp.float32)
        out_ref[...] = ((o[0:1, :] + b3_ref[...])[None]).astype(out_ref.dtype)

    return kernel


# Conservative budget for the streamed x/y tiles + temporaries: fits comfortably
# inside v7x's 64 MiB physical VMEM (v5e/v6e have 128 MiB, never the limit here).
_VMEM_INPUT_BUDGET = 40 * 1024 * 1024


def _pick_batch_tile(B, D, block_b):
    # Per-row VMEM cost: 2 inputs x 2 pipeline buffers x D f32, plus generous
    # headroom for the f32/bf16 temporaries (h1/h2/out columns).
    per_row = 2 * 2 * D * 4 + 8 * 128 * 4
    tb_cap = max(128, (_VMEM_INPUT_BUDGET // per_row) // 128 * 128)
    tb = min(block_b, tb_cap, _round_up(B, 128))
    # v7x has 2 TensorCores and only the "parallel" grid axis shards across them:
    # keep at least 2 grid steps whenever the batch is big enough to split.
    if B >= 256:
        tb = min(tb, _round_up(_cdiv(B, 2), 128))
    return tb


def mi_estimator_forward(x, y, params, *, block_b=4096):
    """x, y: [B, D] float32.

    params (transposed nn.Linear weights so the kernel computes `x @ W + b`):
      w1 [2D, 128], b1 [1, 128], w2 [128, 64], b2 [1, 64], w3 [64, 1], b3 [1, 1].
    """
    assert block_b % 128 == 0
    B, D = x.shape
    assert y.shape == (B, D), (y.shape, x.shape)
    w1, b1 = params["w1"], params["b1"]
    w2, b2 = params["w2"], params["b2"]
    w3, b3 = params["w3"], params["b3"]
    assert w1.shape == (2 * D, 128), f"w1 shape {w1.shape} != {(2 * D, 128)}"
    assert w2.shape == (128, 64) and w3.shape == (64, 1)

    TB = _pick_batch_tile(B, D, block_b)
    num_tiles = _cdiv(B, TB)
    # NOTE: no batch padding — the last tile may be partial; garbage rows produce
    # garbage output rows only, and those are sliced off below.

    # One-time weight prep (tiny): bf16 matmul operands, f32 biases.
    w1b = w1.astype(jnp.bfloat16)                                       # [2D, 128]
    w2b = w2.astype(jnp.bfloat16)                                       # [128, 64]
    b1f = b1.astype(jnp.float32)                                        # [1, 128]
    b2f = b2.astype(jnp.float32)                                        # [1, 64]
    b3f = b3.astype(jnp.float32)                                        # [1, 1]
    # fc3 weight as an [8, 64] bf16 slab, real weights in row 0.
    w3r = jnp.zeros((8, 64), jnp.bfloat16).at[0, :].set(w3[:, 0].astype(jnp.bfloat16))

    fuse_fc1 = (2 * D) <= 128
    kernel = _make_kernel(D, fuse_fc1)

    def resident(arr):
        shp = arr.shape
        return pl.BlockSpec(shp, lambda i: (0,) * len(shp))

    flops = 2 * B * (2 * D * 128 + 128 * 64 + 64)
    bytes_accessed = (2 * B * D * 4 + B * 4
                      + 2 * (w1b.size + w2b.size + w3r.size)
                      + 4 * (b1f.size + b2f.size + b3f.size))
    vmem_bytes = 2 * 2 * TB * D * 4 + 8 * TB * 128 * 4 + 2 * 1024 * 1024
    vmem_limit = int(min(max(vmem_bytes, 32 * 1024 * 1024), 56 * 1024 * 1024))

    out = pl.pallas_call(
        kernel,
        out_shape=jax.ShapeDtypeStruct((num_tiles, 1, TB), jnp.float32),
        grid=(num_tiles,),
        in_specs=[
            pl.BlockSpec((TB, D), lambda i: (i, 0)),   # x batch tile (f32, cast in-kernel)
            pl.BlockSpec((TB, D), lambda i: (i, 0)),   # y batch tile
            resident(w1b), resident(b1f),
            resident(w2b), resident(b2f),
            resident(w3r), resident(b3f),
        ],
        out_specs=pl.BlockSpec((1, 1, TB), lambda i: (i, 0, 0)),
        compiler_params=pltpu.CompilerParams(
            dimension_semantics=("parallel",),
            vmem_limit_bytes=vmem_limit),
        cost_estimate=pl.CostEstimate(flops=int(flops), transcendentals=0,
                                      bytes_accessed=int(bytes_accessed)),
    )(x.astype(jnp.float32), y.astype(jnp.float32),
      w1b, b1f, w2b, b2f, w3r, b3f)

    return out.reshape(num_tiles * TB, 1)[:B]


def init_params(key, input_dim):
    """Deterministic synthetic init matching nn.Linear shapes.

    nn.Linear(in, out) has weight [out, in]; we store the transpose [in, out]
    so the kernel computes x @ W + b with identical semantics.
    """
    k1, k2, k3, k4, k5, k6 = jax.random.split(key, 6)
    d2 = input_dim * 2
    scale = lambda fan_in: 1.0 / jnp.sqrt(jnp.float32(fan_in))
    return {
        "w1": jax.random.uniform(k1, (d2, 128), jnp.float32, -1, 1) * scale(d2),
        "b1": jax.random.uniform(k2, (1, 128), jnp.float32, -1, 1) * scale(d2),
        "w2": jax.random.uniform(k3, (128, 64), jnp.float32, -1, 1) * scale(128),
        "b2": jax.random.uniform(k4, (1, 64), jnp.float32, -1, 1) * scale(128),
        "w3": jax.random.uniform(k5, (64, 1), jnp.float32, -1, 1) * scale(64),
        "b3": jax.random.uniform(k6, (1, 1), jnp.float32, -1, 1) * scale(64),
    }


def _reference_forward(x, y, params):
    """Pure-JAX reference using the same bf16-operand / f32-accumulate recipe.

    (Vs a pure-f32 PyTorch MI_Estimator, results match to ~1e-2.)
    """
    xy = jnp.concatenate([x, y], axis=-1).astype(jnp.bfloat16)
    h = jnp.dot(xy, params["w1"].astype(jnp.bfloat16),
                preferred_element_type=jnp.float32) + params["b1"]
    h = jnp.maximum(h, 0.0)
    h = jnp.dot(h.astype(jnp.bfloat16), params["w2"].astype(jnp.bfloat16),
                preferred_element_type=jnp.float32) + params["b2"]
    h = jnp.maximum(h, 0.0)
    h = jnp.dot(h.astype(jnp.bfloat16), params["w3"].astype(jnp.bfloat16),
                preferred_element_type=jnp.float32) + params["b3"]
    return h


if __name__ == "__main__":
    key = jax.random.PRNGKey(0)
    kx, ky, kp = jax.random.split(key, 3)

    B, D = 8, 16                       # batch=8, input_dim=16 -> concat dim 32
    x = jax.random.normal(kx, (B, D), jnp.float32)
    y = jax.random.normal(ky, (B, D), jnp.float32)
    params = init_params(kp, D)

    out = jax.block_until_ready(mi_estimator_forward(x, y, params))
    ref = _reference_forward(x, y, params)
    assert out.shape == (B, 1), out.shape
    assert jnp.allclose(out, ref, atol=1e-2, rtol=1e-2), "mismatch vs reference"

    # Second config: multi-tile grid (2 tiles -> exercises the v7x split rule) with
    # an unpadded ragged last tile (300 = 256 + 44 rows).
    B2 = 300
    x2 = jax.random.normal(kx, (B2, D), jnp.float32)
    y2 = jax.random.normal(ky, (B2, D), jnp.float32)
    out2 = jax.block_until_ready(mi_estimator_forward(x2, y2, params))
    ref2 = _reference_forward(x2, y2, params)
    assert out2.shape == (B2, 1), out2.shape
    assert jnp.allclose(out2, ref2, atol=1e-2, rtol=1e-2), "mismatch vs reference (tiled)"

    print("KERNEL_OK")
</pallas_src>

<mosaic_0001>
module attributes {stable_mosaic.version = 11 : i64} {
  func.func @kernel(%arg0: i32, %arg1: memref<128x16xf32, #tpu.memory_space<vmem>>, %arg2: memref<128x16xf32, #tpu.memory_space<vmem>>, %arg3: memref<32x128xbf16, #tpu.memory_space<vmem>>, %arg4: memref<1x128xf32, #tpu.memory_space<vmem>>, %arg5: memref<128x64xbf16, #tpu.memory_space<vmem>>, %arg6: memref<1x64xf32, #tpu.memory_space<vmem>>, %arg7: memref<8x64xbf16, #tpu.memory_space<vmem>>, %arg8: memref<1x1xf32, #tpu.memory_space<vmem>>, %arg9: memref<1x1x128xf32, #tpu.memory_space<vmem>>) attributes {dimension_semantics = [#tpu.dimension_semantics<parallel>], iteration_bounds = array<i64: 1>, scalar_prefetch = 0 : i64, scratch_operands = 0 : i64, tpu.core_type = #tpu.core_type<tc>, window_params = [{transform_indices = @transform_0, window_bounds = array<i64: 128, 16>}, {transform_indices = @transform_1, window_bounds = array<i64: 128, 16>}, {pipeline_mode = #tpu.pipeline_mode<synchronous>, transform_indices = @transform_2, window_bounds = array<i64: 32, 128>}, {pipeline_mode = #tpu.pipeline_mode<synchronous>, transform_indices = @transform_3, window_bounds = array<i64: 1, 128>}, {pipeline_mode = #tpu.pipeline_mode<synchronous>, transform_indices = @transform_4, window_bounds = array<i64: 128, 64>}, {pipeline_mode = #tpu.pipeline_mode<synchronous>, transform_indices = @transform_5, window_bounds = array<i64: 1, 64>}, {pipeline_mode = #tpu.pipeline_mode<synchronous>, transform_indices = @transform_6, window_bounds = array<i64: 8, 64>}, {pipeline_mode = #tpu.pipeline_mode<synchronous>, transform_indices = @transform_7, window_bounds = array<i64: 1, 1>}, {transform_indices = @transform_8, window_bounds = array<i64: 1, 1, 128>}]} {
    %c0 = arith.constant 0 : index
    %c0_0 = arith.constant 0 : index
    %0 = vector.load %arg1[%c0, %c0_0] : memref<128x16xf32, #tpu.memory_space<vmem>>, vector<128x16xf32>
    %1 = arith.truncf %0 : vector<128x16xf32> to vector<128x16xbf16>
    %c0_1 = arith.constant 0 : index
    %c0_2 = arith.constant 0 : index
    %2 = vector.load %arg2[%c0_1, %c0_2] : memref<128x16xf32, #tpu.memory_space<vmem>>, vector<128x16xf32>
    %3 = arith.truncf %2 : vector<128x16xf32> to vector<128x16xbf16>
    %4 = tpu.concatenate %1, %3 in 1 : vector<128x16xbf16>, vector<128x16xbf16> -> vector<128x32xbf16>
    %c0_3 = arith.constant 0 : index
    %c0_4 = arith.constant 0 : index
    %5 = vector.load %arg3[%c0_3, %c0_4] : memref<32x128xbf16, #tpu.memory_space<vmem>>, vector<32x128xbf16>
    %cst = arith.constant dense<0.000000e+00> : vector<128x128xf32>
    %6 = tpu.matmul %4, %5, %cst {dimension_numbers = #tpu.dot_dimension_numbers<[1], [0], [0], [1], [0, 0, 1, 1], [], []>} : vector<128x32xbf16>, vector<32x128xbf16>, vector<128x128xf32> -> vector<128x128xf32>
    %c0_5 = arith.constant 0 : index
    %c0_6 = arith.constant 0 : index
    %7 = vector.load %arg4[%c0_5, %c0_6] : memref<1x128xf32, #tpu.memory_space<vmem>>, vector<1x128xf32>
    %8 = vector.broadcast %7 : vector<1x128xf32> to vector<128x128xf32>
    %9 = arith.addf %6, %8 : vector<128x128xf32>
    %cst_7 = arith.constant 0.000000e+00 : f32
    %10 = vector.broadcast %cst_7 : f32 to vector<128x128xf32>
    %11 = arith.maximumf %9, %10 : vector<128x128xf32>
    %12 = arith.truncf %11 : vector<128x128xf32> to vector<128x128xbf16>
    %c0_8 = arith.constant 0 : index
    %c0_9 = arith.constant 0 : index
    %13 = vector.load %arg5[%c0_8, %c0_9] : memref<128x64xbf16, #tpu.memory_space<vmem>>, vector<128x64xbf16>
    %cst_10 = arith.constant dense<0.000000e+00> : vector<128x64xf32>
    %14 = tpu.matmul %12, %13, %cst_10 {dimension_numbers = #tpu.dot_dimension_numbers<[1], [0], [0], [1], [0, 0, 1, 1], [], []>} : vector<128x128xbf16>, vector<128x64xbf16>, vector<128x64xf32> -> vector<128x64xf32>
    %c0_11 = arith.constant 0 : index
    %c0_12 = arith.constant 0 : index
    %15 = vector.load %arg6[%c0_11, %c0_12] : memref<1x64xf32, #tpu.memory_space<vmem>>, vector<1x64xf32>
    %16 = vector.broadcast %15 : vector<1x64xf32> to vector<128x64xf32>
    %17 = arith.addf %14, %16 : vector<128x64xf32>
    %cst_13 = arith.constant 0.000000e+00 : f32
    %18 = vector.broadcast %cst_13 : f32 to vector<128x64xf32>
    %19 = arith.maximumf %17, %18 : vector<128x64xf32>
    %c0_14 = arith.constant 0 : index
    %c0_15 = arith.constant 0 : index
    %20 = vector.load %arg7[%c0_14, %c0_15] : memref<8x64xbf16, #tpu.memory_space<vmem>>, vector<8x64xbf16>
    %21 = arith.truncf %19 : vector<128x64xf32> to vector<128x64xbf16>
    %cst_16 = arith.constant dense<0.000000e+00> : vector<8x128xf32>
    %22 = tpu.matmul %20, %21, %cst_16 {dimension_numbers = #tpu.dot_dimension_numbers<[1], [1], [0], [0], [0, 0, 1, 0], [], []>} : vector<8x64xbf16>, vector<128x64xbf16>, vector<8x128xf32> -> vector<8x128xf32>
    %23 = vector.extract_strided_slice %22 {offsets = [0, 0], sizes = [1, 128], strides = [1, 1]} : vector<8x128xf32> to vector<1x128xf32>
    %c0_17 = arith.constant 0 : index
    %c0_18 = arith.constant 0 : index
    %24 = vector.load %arg8[%c0_17, %c0_18] : memref<1x1xf32, #tpu.memory_space<vmem>>, vector<1x1xf32>
    %25 = vector.broadcast %24 : vector<1x1xf32> to vector<1x128xf32>
    %26 = arith.addf %23, %25 : vector<1x128xf32>
    %27 = vector.shape_cast %26 : vector<1x128xf32> to vector<1x1x128xf32>
    %c0_19 = arith.constant 0 : index
    %c0_20 = arith.constant 0 : index
    %c0_21 = arith.constant 0 : index
    %28 = vector.load %arg9[%c0_19, %c0_20, %c0_21] : memref<1x1x128xf32, #tpu.memory_space<vmem>>, vector<1x1x128xf32>
    tpu.vector_store %arg9[%c0_19, %c0_20, %c0_21], %27 {strides = array<i32>} : memref<1x1x128xf32, #tpu.memory_space<vmem>>, vector<1x1x128xf32>,
    return
  }
  func.func @transform_0(%arg0: i32) -> (i32, i32) {
    %c0_i32 = arith.constant 0 : i32
    %c0_i32_0 = arith.constant 0 : i32
    return %arg0, %c0_i32 : i32, i32
  }
  func.func @transform_1(%arg0: i32) -> (i32, i32) {
    %c0_i32 = arith.constant 0 : i32
    %c0_i32_0 = arith.constant 0 : i32
    return %arg0, %c0_i32 : i32, i32
  }
  func.func @transform_2(%arg0: i32) -> (i32, i32) {
    %c0_i32 = arith.constant 0 : i32
    %c0_i32_0 = arith.constant 0 : i32
    %c0_i32_1 = arith.constant 0 : i32
    return %c0_i32, %c0_i32_0 : i32, i32
  }
  func.func @transform_3(%arg0: i32) -> (i32, i32) {
    %c0_i32 = arith.constant 0 : i32
    %c0_i32_0 = arith.constant 0 : i32
    %c0_i32_1 = arith.constant 0 : i32
    return %c0_i32, %c0_i32_0 : i32, i32
  }
  func.func @transform_4(%arg0: i32) -> (i32, i32) {
    %c0_i32 = arith.constant 0 : i32
    %c0_i32_0 = arith.constant 0 : i32
    %c0_i32_1 = arith.constant 0 : i32
    return %c0_i32, %c0_i32_0 : i32, i32
  }
  func.func @transform_5(%arg0: i32) -> (i32, i32) {
    %c0_i32 = arith.constant 0 : i32
    %c0_i32_0 = arith.constant 0 : i32
    %c0_i32_1 = arith.constant 0 : i32
    return %c0_i32, %c0_i32_0 : i32, i32
  }
  func.func @transform_6(%arg0: i32) -> (i32, i32) {
    %c0_i32 = arith.constant 0 : i32
    %c0_i32_0 = arith.constant 0 : i32
    %c0_i32_1 = arith.constant 0 : i32
    return %c0_i32, %c0_i32_0 : i32, i32
  }
  func.func @transform_7(%arg0: i32) -> (i32, i32) {
    %c0_i32 = arith.constant 0 : i32
    %c0_i32_0 = arith.constant 0 : i32
    %c0_i32_1 = arith.constant 0 : i32
    return %c0_i32, %c0_i32_0 : i32, i32
  }
  func.func @transform_8(%arg0: i32) -> (i32, i32, i32) {
    %c0_i32 = arith.constant 0 : i32
    %c0_i32_0 = arith.constant 0 : i32
    %c0_i32_1 = arith.constant 0 : i32
    return %arg0, %c0_i32, %c0_i32_0 : i32, i32, i32
  }
}

</mosaic_0001>

<bundles_post_ra>
// kernel: tpu_custom_call.1
= control target key start
LH: loop header
LB: loop body
LE: loop exit
PB: predicated region body
PF: predicated region fallthrough
CT: control target
= control target key end

     0   :  { %s861_s0 = inlined_call_operand.vmem [shape: f32[8,16], index: 0, kind: input, shape index: {}]   ;;  %s862_s1 = inlined_call_operand.vmem [shape: f32[8,16], index: 1, kind: input, shape index: {}]   ;;  %s863_s2 = inlined_call_operand.vmem [shape: bf16[32,128], index: 2, kind: input, shape index: {}]   ;;  %s864_s3 = inlined_call_operand.vmem [shape: f32[1,128], index: 3, kind: input, shape index: {}]   ;;  %s865_s4 = inlined_call_operand.vmem [shape: bf16[128,64], index: 4, kind: input, shape index: {}]   ;;  %s866_s5 = inlined_call_operand.vmem [shape: f32[1,64], index: 5, kind: input, shape index: {}]   ;;  %s867_s6 = inlined_call_operand.vmem [shape: bf16[8,64], index: 6, kind: input, shape index: {}]   ;;  %s868_s7 = inlined_call_operand.<no memory space> [shape: f32[1,1], index: 7, kind: input, shape index: {}]   ;;  %s869_s8 = inlined_call_operand.hbm [shape: f32[1,1,128], index: 8, kind: output, shape index: {}]  }
   0x1   :  { %v13_v0 = vstv %s868_s7 }
   0x2   :  { %14 = vst [vmem:[#allocation2] sm:$0x1] %v13_v0 }
   0x3   :  { %v65_v1 = vld [vmem:[%s862_s1] sm:$0xff]  ;;  %v66_v2 = vld [vmem:[%s862_s1 + $0x8] sm:$0xff]  ;;  %v67_v3 = vld [vmem:[%s862_s1 + $0x10] sm:$0xff] }
   0x4   :  { %v81_v4 = vpack.c.bf16 %v65_v1, %v65_v1  ;;  %v82_v5 = vpack.c.bf16 %v66_v2, %v66_v2  ;;  %v68_v6 = vld [vmem:[%s862_s1 + $0x18] sm:$0xff]  ;;  %v69_v7 = vld [vmem:[%s862_s1 + $0x20] sm:$0xff]  ;;  %v70_v8 = vld [vmem:[%s862_s1 + $0x28] sm:$0xff]  ;;  %v83_v9 = vpack.c.bf16 %v67_v3, %v67_v3 }
   0x5   :  { %v84_v10 = vpack.c.bf16 %v68_v6, %v68_v6  ;;  %v85_v11 = vpack.c.bf16 %v69_v7, %v69_v7  ;;  %v86_v12 = vpack.c.bf16 %v70_v8, %v70_v8  ;;  %v71_v13 = vld [vmem:[%s862_s1 + $0x30] sm:$0xff]  ;;  %v72_v14 = vld [vmem:[%s862_s1 + $0x38] sm:$0xff]  ;;  %v73_v15 = vld [vmem:[%s862_s1 + $0x40] sm:$0xff] }
   0x6   :  { %v153_v16 = vunpack.c.l.b16 %v81_v4  ;;  %v154_v17 = vunpack.c.l.b16 %v82_v5  ;;  %v74_v18 = vld [vmem:[%s862_s1 + $0x48] sm:$0xff]  ;;  %v87_v21 = vpack.c.bf16 %v71_v13, %v71_v13  ;;  %v88_v22 = vpack.c.bf16 %v72_v14, %v72_v14  ;;  %v75_v23 = vld [vmem:[%s862_s1 + $0x50] sm:$0xff]  ;;  %v76_v28 = vld [vmem:[%s862_s1 + $0x58] sm:$0xff] }
   0x7   :  { %v157_v19 = vunpack.c.l.b16 %v85_v11  ;;  %v158_v20 = vunpack.c.l.b16 %v86_v12  ;;  %v586_v24 = vld [vmem:[%s863_s2 + $0x8] sm:$0xff]  ;;  %v89_v26 = vpack.c.bf16 %v73_v15, %v73_v15  ;;  %v90_v27 = vpack.c.bf16 %v74_v18, %v74_v18  ;;  %v585_v29 = vld [vmem:[%s863_s2] sm:$0xff] }
   0x8   :  { %v169_v25 = vpack.c.b16 %v154_v17, %v153_v16  ;;  %v155_v30 = vunpack.c.l.b16 %v83_v9  ;;  %v156_v31 = vunpack.c.l.b16 %v84_v10  ;;  %261 = vmatpush.bf16.msra.mxu0 %v586_v24 }
   0x9   :  { %v171_v32 = vpack.c.b16 %v158_v20, %v157_v19 }
   0xa   :  { %15 = vsyncpa [#allocation4], 0  ;;  %s636_s12 = smov 16   ;;  %v161_v33 = vunpack.c.l.b16 %v89_v26  ;;  %v162_v34 = vunpack.c.l.b16 %v90_v27  ;;  %v91_v35 = vpack.c.bf16 %v75_v23, %v75_v23  ;;  %v159_v36 = vunpack.c.l.b16 %v87_v21  ;;  %v77_v38 = vld [vmem:[%s862_s1 + $0x60] sm:$0xff]  ;;  %v78_v39 = vld [vmem:[%s862_s1 + $0x68] sm:$0xff]  ;;  %s527_s22 = sshll.u32 %s869_s8, 4  ;;  %s528_s22 = int_to_ptr.hbm [resolvable:$true] %s527_s22 }
   0xb   :  { %177 = vrot.lane.b32.xlu0 %v169_v25, %s636_s12  ;;  %181 = vrot.lane.b32.xlu1 %v171_v32, %s636_s12  ;;  %v160_v37 = vunpack.c.l.b16 %v88_v22  ;;  %v92_v40 = vpack.c.bf16 %v76_v28, %v76_v28  ;;  %v79_v42 = vld [vmem:[%s862_s1 + $0x70] sm:$0xff]  ;;  %v80_v43 = vld [vmem:[%s862_s1 + $0x78] sm:$0xff]  ;;  %v170_v44 = vpack.c.b16 %v156_v31, %v155_v30  ;;  %v93_v45 = vpack.c.bf16 %v77_v38, %v77_v38  ;;  %s638_s1 = smov [#allocation3]  }
   0xc   :  { %v173_v41 = vpack.c.b16 %v162_v34, %v161_v33  ;;  %262 = vmatpush.bf16.msra.mxu0 %v585_v29  ;;  %v94_v46 = vpack.c.bf16 %v78_v39, %v78_v39  ;;  %v163_v47 = vunpack.c.l.b16 %v91_v35  ;;  %v95_v50 = vpack.c.bf16 %v79_v42, %v79_v42  ;;  %v33_v59 = vld [vmem:[%s861_s0] sm:$0xff]  ;;  %v34_v60 = vld [vmem:[%s861_s0 + $0x8] sm:$0xff]  ;;  %v35_v3 = vld [vmem:[%s861_s0 + $0x10] sm:$0xff]  ;;  %s525_s19 = sshll.u32 %s638_s1, 4  ;;  %s526_s19 = int_to_ptr.vmem [resolvable:$true] %s525_s19 }
   0xd   :  { %v164_v48 = vunpack.c.l.b16 %v92_v40  ;;  %v172_v49 = vpack.c.b16 %v160_v37, %v159_v36  ;;  %v96_v51 = vpack.c.bf16 %v80_v43, %v80_v43  ;;  %v165_v52 = vunpack.c.l.b16 %v93_v45  ;;  %v36_v4 = vld [vmem:[%s861_s0 + $0x18] sm:$0xff]  ;;  %v37_v13 = vld [vmem:[%s861_s0 + $0x20] sm:$0xff]  ;;  %v38_v14 = vld [vmem:[%s861_s0 + $0x28] sm:$0xff] }
   0xe   :  { %185 = vrot.lane.b32.xlu2 %v173_v41, %s636_s12  ;;  %v166_v53 = vunpack.c.l.b16 %v94_v46  ;;  %v167_v55 = vunpack.c.l.b16 %v95_v50  ;;  %v49_v61 = vpack.c.bf16 %v33_v59, %v33_v59  ;;  %v50_v62 = vpack.c.bf16 %v34_v60, %v34_v60  ;;  %v39_v22 = vld [vmem:[%s861_s0 + $0x30] sm:$0xff]  ;;  %v40_v23 = vld [vmem:[%s861_s0 + $0x38] sm:$0xff]  ;;  %v41_v31 = vld [vmem:[%s861_s0 + $0x40] sm:$0xff] }
   0xf   :  { %v174_v54 = vpack.c.b16 %v164_v48, %v163_v47  ;;  %v168_v56 = vunpack.c.l.b16 %v96_v51  ;;  %vm193_vm0 = vcmask 130048   ;;  %vm238_vm1 = vcmask 261120   ;;  %v42_v32 = vld [vmem:[%s861_s0 + $0x48] sm:$0xff]  ;;  %v43_v40 = vld [vmem:[%s861_s0 + $0x50] sm:$0xff]  ;;  %v44_v41 = vld [vmem:[%s861_s0 + $0x58] sm:$0xff] }
  0x10   :  { %v175_v57 = vpack.c.b16 %v166_v53, %v165_v52  ;;  %v113_v63 = vunpack.c.l.b16 %v49_v61  ;;  %v114_v0 = vunpack.c.l.b16 %v50_v62  ;;  %v51_v6 = vpack.c.bf16 %v35_v3, %v35_v3  ;;  %v594_v42 = vld [vmem:[%s865_s4 + $0x38] sm:$0xff]  ;;  %v45_v50 = vld [vmem:[%s861_s0 + $0x60] sm:$0xff]  ;;  %v46_v51 = vld [vmem:[%s861_s0 + $0x68] sm:$0xff] }
  0x11   :  { %v176_v58 = vpack.c.b16 %v168_v56, %v167_v55  ;;  %v52_v7 = vpack.c.bf16 %v36_v4, %v36_v4  ;;  %v53_v15 = vpack.c.bf16 %v37_v13, %v37_v13  ;;  %v54_v16 = vpack.c.bf16 %v38_v14, %v38_v14  ;;  %396 = vmatpush.bf16.msra.mxu1 %v594_v42  ;;  %v593_v52 = vld [vmem:[%s865_s4 + $0x30] sm:$0xff]  ;;  %v592_v55 = vld [vmem:[%s865_s4 + $0x28] sm:$0xff]  ;;  %v590_v61 = vld [vmem:[%s865_s4 + $0x18] sm:$0xff] }
  0x12   :  { %v129_v1 = vpack.c.b16 %v114_v0, %v113_v63  ;;  %v115_v8 = vunpack.c.l.b16 %v51_v6  ;;  %v55_v24 = vpack.c.bf16 %v39_v22, %v39_v22  ;;  %v56_v25 = vpack.c.bf16 %v40_v23, %v40_v23  ;;  %595 = vmatpush.bf16.msra.mxu3 %v594_v42  ;;  %v47_v63 = vld [vmem:[%s861_s0 + $0x70] sm:$0xff]  ;;  %v48_v0 = vld [vmem:[%s861_s0 + $0x78] sm:$0xff]  ;;  %v588_v4 = vld [vmem:[%s865_s4 + $0x8] sm:$0xff] }
  0x13   :  { %179 = vrot.lane.b32.xlu0 %v170_v44, %s636_s12  ;;  %183 = vrot.lane.b32.xlu1 %v172_v49, %s636_s12  ;;  %v116_v9 = vunpack.c.l.b16 %v52_v7  ;;  %v117_v17 = vunpack.c.l.b16 %v53_v15  ;;  %v118_v18 = vunpack.c.l.b16 %v54_v16  ;;  %v57_v33 = vpack.c.bf16 %v41_v31, %v41_v31  ;;  %v587_v7 = vld [vmem:[%s865_s4] sm:$0xff] }
  0x14   :  { %v119_v26 = vunpack.c.l.b16 %v55_v24  ;;  %v120_v27 = vunpack.c.l.b16 %v56_v25  ;;  %v58_v34 = vpack.c.bf16 %v42_v32, %v42_v32  ;;  %v59_v43 = vpack.c.bf16 %v43_v40, %v43_v40 }
  0x15   :  { %v130_v10 = vpack.c.b16 %v116_v9, %v115_v8  ;;  %v131_v19 = vpack.c.b16 %v118_v18, %v117_v17  ;;  %v121_v35 = vunpack.c.l.b16 %v57_v33  ;;  %v60_v44 = vpack.c.bf16 %v44_v41, %v44_v41  ;;  %397 = vmatpush.bf16.msra.mxu1 %v593_v52 }
  0x16   :  { %187 = vrot.lane.b32.xlu2 %v174_v54, %s636_s12  ;;  %v132_v28 = vpack.c.b16 %v120_v27, %v119_v26  ;;  %v122_v36 = vunpack.c.l.b16 %v58_v34  ;;  %v123_v45 = vunpack.c.l.b16 %v59_v43  ;;  %v61_v53 = vpack.c.bf16 %v45_v50, %v45_v50  ;;  %596 = vmatpush.bf16.msra.mxu3 %v593_v52 }
  0x17   :  { %v124_v46 = vunpack.c.l.b16 %v60_v44  ;;  %v62_v54 = vpack.c.bf16 %v46_v51, %v46_v51  ;;  %v64_v3 = vpack.c.bf16 %v48_v0, %v48_v0  ;;  %vm470_vm2 = vcmask 523264  }
  0x18   :  { %v133_v37 = vpack.c.b16 %v122_v36, %v121_v35  ;;  %v125_v56 = vunpack.c.l.b16 %v61_v53 }
  0x19   :  { %v134_v47 = vpack.c.b16 %v124_v46, %v123_v45  ;;  %398 = vmatpush.bf16.msra.mxu1 %v592_v55  ;;  %v128_v6 = vunpack.c.l.b16 %v64_v3 }
  0x1a   :  { %597 = vmatpush.bf16.msra.mxu3 %v592_v55 }
  0x1b   :  { %189 = vrot.lane.b32.xlu0 %v175_v57, %s636_s12  ;;  %191 = vrot.lane.b32.xlu1 %v176_v58, %s636_s12  ;;  %v126_v57 = vunpack.c.l.b16 %v62_v54  ;;  %v591_v58 = vld [vmem:[%s865_s4 + $0x20] sm:$0xff] }
  0x1d   :  { %v135_v59 = vpack.c.b16 %v126_v57, %v125_v56  ;;  %399 = vmatpush.bf16.msra.mxu1 %v591_v58 }
  0x1e   :  { %598 = vmatpush.bf16.msra.mxu3 %v591_v58 }
  0x21   :  { %400 = vmatpush.bf16.msra.mxu1 %v590_v61 }
  0x22   :  { %599 = vmatpush.bf16.msra.mxu3 %v590_v61 }
  0x68   :  { %v186_v38 = vpop.permute.xlu2 %185 }
  0x69   :  { %v208_v39 = vsel %vm193_vm0, %v133_v37, %v186_v38 }
  0x70   :  { %v188_v48 = vpop.permute.xlu2 %187 }
  0x71   :  { %v211_v49 = vsel %vm193_vm0, %v134_v47, %v188_v48 }
  0x7d   :  { %v178_v2 = vpop.permute.xlu0 %177  ;;  %v182_v20 = vpop.permute.xlu1 %181 }
  0x7e   :  { %v196_v5 = vsel %vm193_vm0, %v129_v1, %v178_v2  ;;  %v202_v21 = vsel %vm193_vm0, %v131_v19, %v182_v20  ;;  %v589_v1 = vld [vmem:[%s865_s4 + $0x10] sm:$0xff]  ;;  %v63_v2 = vpack.c.bf16 %v47_v63, %v47_v63 }
  0x7f   :  { %544 = vmatmul.msk.bf16.vlgmr.msra.gmra.mxu0 %vm238_vm1, %v196_v5  ;;  %401 = vmatpush.bf16.msra.mxu1 %v589_v1 }
  0x80   :  { %600 = vmatpush.bf16.msra.mxu3 %v589_v1  ;;  %v127_v5 = vunpack.c.l.b16 %v63_v2 }
  0x82   :  { %v136_v8 = vpack.c.b16 %v128_v6, %v127_v5  ;;  %v609_v5 = vld [vmem:[%s866_s5] ss:$0 sm:$0xff] }
  0x83   :  { %402 = vmatpush.bf16.msra.mxu1 %v588_v4 }
  0x84   :  { %601 = vmatpush.bf16.msra.mxu3 %v588_v4 }
  0x85   :  { %v180_v11 = vpop.permute.xlu0 %179  ;;  %v184_v29 = vpop.permute.xlu1 %183 }
  0x86   :  { %v199_v12 = vsel %vm193_vm0, %v130_v10, %v180_v11  ;;  %v205_v30 = vsel %vm193_vm0, %v132_v28, %v184_v29 }
  0x87   :  { %403 = vmatpush.bf16.msra.mxu1 %v587_v7 }
  0x88   :  { %602 = vmatpush.bf16.msra.mxu3 %v587_v7 }
  0x8d   :  { %v190_v60 = vpop.permute.xlu0 %189  ;;  %v192_v9 = vpop.permute.xlu1 %191 }
  0x8e   :  { %v214_v62 = vsel %vm193_vm0, %v135_v59, %v190_v60  ;;  %v217_v10 = vsel %vm193_vm0, %v136_v8, %v192_v9 }
  0x8f   :  { %545 = vmatmul.msk.bf16.gmra.mxu0 %vm238_vm1, %v199_v12  ;;  %v608_v12 = vld [vmem:[%s864_s3] ss:$0 sm:$0xff] }
  0x9f   :  { %546 = vmatmul.msk.bf16.gmra.mxu0 %vm238_vm1, %v202_v21 }
  0xaf   :  { %547 = vmatmul.msk.bf16.gmra.mxu0 %vm238_vm1, %v205_v30 }
  0xbf   :  { %548 = vmatmul.msk.bf16.gmra.mxu0 %vm238_vm1, %v208_v39 }
  0xcf   :  { %549 = vmatmul.msk.bf16.gmra.mxu0 %vm238_vm1, %v211_v49 }
  0xdf   :  { %550 = vmatmul.msk.bf16.gmra.mxu0 %vm238_vm1, %v214_v62 }
  0xef   :  { %551 = vmatmul.msk.bf16.gmra.mxu0 %vm238_vm1, %v217_v10 }
  0xfc   :  { %v264_v11 = vpop.f32.mrf.mxu0 }
  0xfd   :  { %v265_v13 = vadd.f32 %v608_v12, %v264_v11 }
  0xff   :  { %v304_v16 = vmax.f32 %v265_v13, 0.0 }
 0x104   :  { %v266_v14 = vpop.f32.mrf.mxu0 }
 0x105   :  { %v267_v15 = vadd.f32 %v608_v12, %v266_v14 }
 0x107   :  { %v305_v17 = vmax.f32 %v267_v15, 0.0 }
 0x109   :  { %v320_v18 = vpack.c.bf16 %v305_v17, %v304_v16 }
 0x10b   :  { %404 = vmatmul.bf16.vlgmr.msra.gmra.mxu1 %v320_v18 }
 0x10c   :  { %v269_v19 = vpop.f32.mrf.mxu0 }
 0x10d   :  { %v270_v20 = vadd.f32 %v608_v12, %v269_v19 }
 0x10f   :  { %v306_v23 = vmax.f32 %v270_v20, 0.0 }
 0x114   :  { %v271_v21 = vpop.f32.mrf.mxu0 }
 0x115   :  { %v272_v22 = vadd.f32 %v608_v12, %v271_v21 }
 0x117   :  { %v307_v24 = vmax.f32 %v272_v22, 0.0 }
 0x119   :  { %v321_v25 = vpack.c.bf16 %v307_v24, %v306_v23 }
 0x11b   :  { %409 = vmatmul.bf16.gmra.mxu1 %v321_v25 }
 0x11c   :  { %v274_v26 = vpop.f32.mrf.mxu0 }
 0x11d   :  { %v275_v27 = vadd.f32 %v608_v12, %v274_v26 }
 0x11f   :  { %v308_v30 = vmax.f32 %v275_v27, 0.0 }
 0x124   :  { %v276_v28 = vpop.f32.mrf.mxu0 }
 0x125   :  { %v277_v29 = vadd.f32 %v608_v12, %v276_v28 }
 0x127   :  { %v309_v31 = vmax.f32 %v277_v29, 0.0 }
 0x129   :  { %v322_v32 = vpack.c.bf16 %v309_v31, %v308_v30 }
 0x12b   :  { %414 = vmatmul.bf16.gmra.mxu1 %v322_v32 }
 0x12c   :  { %v279_v33 = vpop.f32.mrf.mxu0 }
 0x12d   :  { %v280_v34 = vadd.f32 %v608_v12, %v279_v33 }
 0x12f   :  { %v310_v37 = vmax.f32 %v280_v34, 0.0 }
 0x134   :  { %v281_v35 = vpop.f32.mrf.mxu0 }
 0x135   :  { %v282_v36 = vadd.f32 %v608_v12, %v281_v35 }
 0x137   :  { %v311_v38 = vmax.f32 %v282_v36, 0.0 }
 0x139   :  { %v323_v39 = vpack.c.bf16 %v311_v38, %v310_v37 }
 0x13b   :  { %419 = vmatmul.bf16.gmra.mxu1 %v323_v39 }
 0x13c   :  { %v284_v40 = vpop.f32.mrf.mxu0 }
 0x13d   :  { %v285_v41 = vadd.f32 %v608_v12, %v284_v40 }
 0x13f   :  { %v312_v44 = vmax.f32 %v285_v41, 0.0 }
 0x144   :  { %v286_v42 = vpop.f32.mrf.mxu0 }
 0x145   :  { %v287_v43 = vadd.f32 %v608_v12, %v286_v42 }
 0x147   :  { %v313_v45 = vmax.f32 %v287_v43, 0.0 }
 0x149   :  { %v324_v46 = vpack.c.bf16 %v313_v45, %v312_v44 }
 0x14b   :  { %424 = vmatmul.bf16.gmra.mxu1 %v324_v46 }
 0x14c   :  { %v289_v47 = vpop.f32.mrf.mxu0 }
 0x14d   :  { %v290_v48 = vadd.f32 %v608_v12, %v289_v47 }
 0x14f   :  { %v314_v51 = vmax.f32 %v290_v48, 0.0 }
 0x154   :  { %v291_v49 = vpop.f32.mrf.mxu0 }
 0x155   :  { %v292_v50 = vadd.f32 %v608_v12, %v291_v49 }
 0x157   :  { %v315_v52 = vmax.f32 %v292_v50, 0.0 }
 0x159   :  { %v325_v53 = vpack.c.bf16 %v315_v52, %v314_v51 }
 0x15b   :  { %429 = vmatmul.bf16.vlgmr.msra.gmra.mxu3 %v325_v53 }
 0x15c   :  { %v294_v54 = vpop.f32.mrf.mxu0 }
 0x15d   :  { %v295_v55 = vadd.f32 %v608_v12, %v294_v54 }
 0x15f   :  { %v316_v58 = vmax.f32 %v295_v55, 0.0 }
 0x164   :  { %v296_v56 = vpop.f32.mrf.mxu0 }
 0x165   :  { %v297_v57 = vadd.f32 %v608_v12, %v296_v56 }
 0x167   :  { %v317_v59 = vmax.f32 %v297_v57, 0.0 }
 0x169   :  { %v326_v60 = vpack.c.bf16 %v317_v59, %v316_v58 }
 0x16b   :  { %434 = vmatmul.bf16.gmra.mxu3 %v326_v60 }
 0x16c   :  { %v299_v61 = vpop.f32.mrf.mxu0 }
 0x16d   :  { %v300_v62 = vadd.f32 %v608_v12, %v299_v61 }
 0x16f   :  { %v318_v1 = vmax.f32 %v300_v62, 0.0 }
 0x174   :  { %v301_v63 = vpop.f32.mrf.mxu0 }
 0x175   :  { %v302_v0 = vadd.f32 %v608_v12, %v301_v63 }
 0x177   :  { %v319_v2 = vmax.f32 %v302_v0, 0.0  ;;  %v511_v0 = vld [vmem:[#allocation2] sm:$0x1] }
 0x179   :  { %v327_v3 = vpack.c.bf16 %v319_v2, %v318_v1  ;;  %v637_v1 = vmov 0  }
 0x17a   :  { %606 = vset.pattern.permute.xlu2 %v637_v1  ;;  %607 = vset.pattern.permute.xlu0 %v637_v1 }
 0x17b   :  { %439 = vmatmul.bf16.gmra.mxu3 %v327_v3  ;;  %514 = vperm.xlu2 %606, %v511_v0  }
 0x188   :  { %v405_v4 = vpop.f32.mrf.mxu1 }
 0x189   :  { %v406_v6 = vadd.f32 %v609_v5, %v405_v4 }
 0x18b   :  { %v445_v9 = vmax.f32 %v406_v6, 0.0 }
 0x190   :  { %v407_v7 = vpop.f32.mrf.mxu1 }
 0x191   :  { %v408_v8 = vadd.f32 %v609_v5, %v407_v7  ;;  %v461_v7 = vld [vmem:[%s867_s6] sm:$0xf] }
 0x193   :  { %v446_v10 = vmax.f32 %v408_v8, 0.0 }
 0x195   :  { %v843_v11 = vpack.c.bf16 %v446_v10, %v445_v9 }
 0x198   :  { %v410_v13 = vpop.f32.mrf.mxu1 }
 0x199   :  { %v411_v14 = vadd.f32 %v609_v5, %v410_v13 }
 0x19b   :  { %v447_v16 = vmax.f32 %v411_v14, 0.0 }
 0x1a0   :  { %v412_v15 = vpop.f32.mrf.mxu1 }
 0x1a1   :  { %v413_v12 = vadd.f32 %v609_v5, %v412_v15 }
 0x1a3   :  { %v448_v17 = vmax.f32 %v413_v12, 0.0 }
 0x1a5   :  { %v463_v18 = vpack.c.bf16 %v448_v17, %v447_v16 }
 0x1a7   :  { %v478_v6 = vsel %vm470_vm2, %v463_v18, 0 }
 0x1a8   :  { %v415_v20 = vpop.f32.mrf.mxu1 }
 0x1a9   :  { %v416_v61 = vadd.f32 %v609_v5, %v415_v20 }
 0x1ab   :  { %v449_v2 = vmax.f32 %v416_v61, 0.0 }
 0x1b0   :  { %v417_v22 = vpop.f32.mrf.mxu1 }
 0x1b1   :  { %v418_v59 = vadd.f32 %v609_v5, %v417_v22 }
 0x1b3   :  { %v450_v62 = vmax.f32 %v418_v59, 0.0 }
 0x1b5   :  { %v464_v3 = vpack.c.bf16 %v450_v62, %v449_v2 }
 0x1b7   :  { %v481_v4 = vsel %vm470_vm2, %v464_v3, 0 }
 0x1b8   :  { %v420_v25 = vpop.f32.mrf.mxu1 }
 0x1b9   :  { %v421_v55 = vadd.f32 %v609_v5, %v420_v25 }
 0x1bb   :  { %v451_v58 = vmax.f32 %v421_v55, 0.0 }
 0x1c0   :  { %v422_v27 = vpop.f32.mrf.mxu1 }
 0x1c1   :  { %v423_v53 = vadd.f32 %v609_v5, %v422_v27 }
 0x1c3   :  { %v452_v56 = vmax.f32 %v423_v53, 0.0 }
 0x1c5   :  { %v465_v60 = vpack.c.bf16 %v452_v56, %v451_v58 }
 0x1c7   :  { %v484_v63 = vsel %vm470_vm2, %v465_v60, 0 }
 0x1c8   :  { %v425_v36 = vpop.f32.mrf.mxu1 }
 0x1c9   :  { %v426_v49 = vadd.f32 %v609_v5, %v425_v36 }
 0x1cb   :  { %v453_v52 = vmax.f32 %v426_v49, 0.0 }
 0x1d0   :  { %v427_v45 = vpop.f32.mrf.mxu1 }
 0x1d1   :  { %v428_v47 = vadd.f32 %v609_v5, %v427_v45 }
 0x1d3   :  { %v454_v50 = vmax.f32 %v428_v47, 0.0 }
 0x1d5   :  { %v466_v54 = vpack.c.bf16 %v454_v50, %v453_v52  ;;  %v515_v8 = vpop.permute.xlu2 %514 }
 0x1d6   :  { %v517_v9 = vperm.slane %v515_v8, 0 }
 0x1d7   :  { %v487_v57 = vsel %vm470_vm2, %v466_v54, 0 }
 0x1de   :  { %v430_v19 = vpop.f32.mrf.mxu3 }
 0x1df   :  { %v431_v42 = vadd.f32 %v609_v5, %v430_v19 }
 0x1e1   :  { %v455_v46 = vmax.f32 %v431_v42, 0.0 }
 0x1e6   :  { %v432_v21 = vpop.f32.mrf.mxu3 }
 0x1e7   :  { %v433_v40 = vadd.f32 %v609_v5, %v432_v21 }
 0x1e9   :  { %v456_v43 = vmax.f32 %v433_v40, 0.0 }
 0x1eb   :  { %v467_v48 = vpack.c.bf16 %v456_v43, %v455_v46 }
 0x1ed   :  { %v490_v51 = vsel %vm470_vm2, %v467_v48, 0 }
 0x1ee   :  { %v435_v23 = vpop.f32.mrf.mxu3 }
 0x1ef   :  { %v436_v34 = vadd.f32 %v609_v5, %v435_v23 }
 0x1f1   :  { %v457_v39 = vmax.f32 %v436_v34, 0.0 }
 0x1f6   :  { %v437_v24 = vpop.f32.mrf.mxu3 }
 0x1f7   :  { %v438_v31 = vadd.f32 %v609_v5, %v437_v24 }
 0x1f9   :  { %v458_v37 = vmax.f32 %v438_v31, 0.0 }
 0x1fb   :  { %v468_v41 = vpack.c.bf16 %v458_v37, %v457_v39 }
 0x1fd   :  { %v493_v44 = vsel %vm470_vm2, %v468_v41, 0 }
 0x1fe   :  { %v440_v26 = vpop.f32.mrf.mxu3 }
 0x1ff   :  { %v441_v28 = vadd.f32 %v609_v5, %v440_v26 }
 0x201   :  { %v459_v32 = vmax.f32 %v441_v28, 0.0 }
 0x206   :  { %v442_v29 = vpop.f32.mrf.mxu3 }
 0x207   :  { %v443_v30 = vadd.f32 %v609_v5, %v442_v29  ;;  %v475_v5 = vsel %vm470_vm2, %v843_v11, 0 }
 0x209   :  { %v460_v33 = vmax.f32 %v443_v30, 0.0 }
 0x20b   :  { %v469_v35 = vpack.c.bf16 %v460_v33, %v459_v32 }
 0x20d   :  { %v496_v38 = vsel %vm470_vm2, %v469_v35, 0 }
 0x20e   :  { %498 = vmatpush.bf16.xpose.msra.mxu2 %v496_v38 }
 0x216   :  { %499 = vmatpush.bf16.xpose.msra.mxu2 %v493_v44 }
 0x21e   :  { %500 = vmatpush.bf16.xpose.msra.mxu2 %v490_v51 }
 0x226   :  { %501 = vmatpush.bf16.xpose.msra.mxu2 %v487_v57 }
 0x22e   :  { %502 = vmatpush.bf16.xpose.msra.mxu2 %v484_v63 }
 0x236   :  { %503 = vmatpush.bf16.xpose.msra.mxu2 %v481_v4 }
 0x23e   :  { %504 = vmatpush.bf16.xpose.msra.mxu2 %v478_v6 }
 0x246   :  { %505 = vmatpush.bf16.xpose.msra.mxu2 %v475_v5 }
 0x24d   :  { %584 = vmatmul.msk.bf16.vlgmr.msra.gmra.mxu2 %vm470_vm2, %v461_v7 }
 0x2d0   :  { %v507_v10 = vpop.f32.mrf.mxu2 }
 0x2d1   :  { %v518_v13 = vadd.f32 %v517_v9, %v507_v10 }
 0x2d3   :  { %519 = vst [vmem:[#allocation3] sm:$0x1] %v518_v13 }
 0x2d4   :  { %530 = dma.vmem_to_hbm [thread:$0]  %s526_s19, 16, %s528_s22, [#allocation4]  }
 0x2d8   :  { %v509_v11 = vpop.f32.mrf.mxu2 }
 0x2d9   :  { %634 = dma.done.wait [#allocation4], 16  }
 0x2da   :  { %635 = vsyncadd [#allocation4], 4294967280 }
 0x2db   :  { %535 = vsyncpa [#allocation4], 1 }

</bundles_post_ra>
